<compile_context>
chip_gen: v7x
topology: tpu7x:2x2x1
jax: 0.10.0
libtpu: 0.0.40
codegen_flags: <defaults>
</compile_context>

<pallas_src>
import functools
import math

import numpy as np

import jax
import jax.numpy as jnp
from jax.experimental import pallas as pl
from jax.experimental.pallas import tpu as pltpu


@functools.lru_cache(maxsize=None)
def _membership_matrix(h, w, kh, kw, oh, ow, dtype_str, transposed):
    """0/1 matrix C[q, m] = 1 iff pixel q = hh*W+ww lies in pooling window m = r*ow+p.

    Tail rows/cols (hh//kh >= oh or ww//kw >= ow) match no window, which matches
    F.avg_pool2d with stride == kernel, no padding, floor mode.  Built host-side
    (static shapes) and cached, so the kernel only sees a ready constant.
    """
    q = np.arange(h * w)
    m = np.arange(oh * ow)
    row_ok = (q[:, None] // w) // kh == (m[None, :] // ow)
    col_ok = (q[:, None] % w) // kw == (m[None, :] % ow)
    cmat = (row_ok & col_ok).astype(np.float32)
    if transposed:
        cmat = cmat.T  # (oh*ow, h*w)
    # 0/1 values are exact in bf16/f32, so store in the input dtype (feeds the
    # MXU directly, no in-kernel cast — relevant on v5e which lacks bf16 VALU).
    return jnp.asarray(cmat, dtype=dtype_str)


def _spp_avg_kernel_t(x_ref, ct_ref, o_ref, *, inv_area):
    # x_ref : (B, H*W)      all N*C images, native dtype
    # ct_ref: (oh*ow, H*W)  transposed membership matrix (host constant)
    # o_ref : (oh*ow, B)    pooled output, already in permuted (m, channel) order
    acc = jax.lax.dot_general(
        ct_ref[...], x_ref[...],
        dimension_numbers=(((1,), (1,)), ((), ())),   # contract over pixels (rhs-T)
        preferred_element_type=jnp.float32,
    )
    o_ref[...] = (acc * inv_area).astype(o_ref.dtype)


def _spp_avg_kernel(x_ref, c_ref, o_ref, *, inv_area):
    # x_ref: (B, H*W); c_ref: (H*W, oh*ow); o_ref: (B, oh*ow)
    acc = jnp.dot(x_ref[...], c_ref[...], preferred_element_type=jnp.float32)
    o_ref[...] = (acc * inv_area).astype(o_ref.dtype)


def single_spp_layer(x, split_coef=8, pool_type="avg_pool"):
    """Matches single_SPPLayer.forward for NCHW input x."""
    n, c, h, w = x.shape
    kh = math.ceil(h / split_coef)
    kw = math.ceil(w / split_coef)
    # F.avg_pool2d output size with stride == kernel, no padding, floor mode:
    oh = (h - kh) // kh + 1
    ow = (w - kw) // kw + 1

    if pool_type != "avg_pool":
        # TODO(synk): max_pool branch not implemented in Pallas (module default is avg_pool).
        raise NotImplementedError("only avg_pool is implemented")

    b = n * c
    out_rows = split_coef * split_coef
    # The PyTorch module hard-codes .reshape([split_coef**2, 2]); make the
    # implied constraint explicit instead of failing in an opaque reshape.
    if b * oh * ow != out_rows * 2:
        raise ValueError(
            f"single_SPPLayer requires N*C*oh*ow == {out_rows * 2} "
            f"(got N*C={b}, oh={oh}, ow={ow}); the module's view([{out_rows}, 2]) "
            "cannot be satisfied otherwise."
        )

    inv_area = 1.0 / (kh * kw)
    dtype_str = str(x.dtype)
    x_rows = x.reshape(b, h * w)  # row-major pixel flatten: q = hh*w + ww

    vmem_spec = pl.BlockSpec(memory_space=pltpu.MemorySpace.VMEM)

    if n == 1:
        # Fused epilogue: permute(0,2,3,1)+reshape on (1, C, oh, ow) is exactly
        # the row-major flatten of (oh*ow, C), which the kernel emits directly.
        ct = _membership_matrix(h, w, kh, kw, oh, ow, dtype_str, True)
        pooled = pl.pallas_call(
            functools.partial(_spp_avg_kernel_t, inv_area=inv_area),
            out_shape=jax.ShapeDtypeStruct((oh * ow, b), x.dtype),
            in_specs=[vmem_spec, vmem_spec],
            out_specs=vmem_spec,
        )(x_rows, ct)
        return pooled.reshape(out_rows, 2)  # no-op when C == 2

    cmat = _membership_matrix(h, w, kh, kw, oh, ow, dtype_str, False)
    pooled = pl.pallas_call(
        functools.partial(_spp_avg_kernel, inv_area=inv_area),
        out_shape=jax.ShapeDtypeStruct((b, oh * ow), x.dtype),
        in_specs=[vmem_spec, vmem_spec],
        out_specs=vmem_spec,
    )(x_rows, cmat)

    if c == 1:
        # (N, oh*ow) row-major flatten == ((n*oh + r)*ow + p): contiguous reshape only.
        return pooled.reshape(out_rows, 2)

    # General fallback (N>1 and C>1, only possible when oh*ow < split_coef**2).
    pooled = pooled.reshape(n, c, oh, ow)
    tensor = jnp.transpose(pooled, (0, 2, 3, 1))
    return tensor.reshape(out_rows, 2)


if __name__ == "__main__":
    key = jax.random.PRNGKey(0)

    def ref_spp(x, split_coef=8):
        n_, c_, h_, w_ = x.shape
        kh_, kw_ = h_ // split_coef, w_ // split_coef
        r = x.reshape(n_, c_, split_coef, kh_, split_coef, kw_).mean(axis=(3, 5))
        return jnp.transpose(r, (0, 2, 3, 1)).reshape(split_coef * split_coef, 2)

    # Canonical case (N=1, C=2): fused-transpose kernel path.
    N, C, H, W = 1, 2, 16, 16
    x = jax.random.normal(key, (N, C, H, W), dtype=jnp.float32)
    out = jax.block_until_ready(single_spp_layer(x, split_coef=8, pool_type="avg_pool"))
    assert out.shape == (64, 2), out.shape
    assert jnp.allclose(out, ref_spp(x), atol=1e-5, rtol=1e-5)

    # Alternate case (N=2, C=1): straight pooled-slab kernel path.
    x2 = jax.random.normal(jax.random.PRNGKey(1), (2, 1, 16, 16), dtype=jnp.float32)
    out2 = jax.block_until_ready(single_spp_layer(x2, split_coef=8, pool_type="avg_pool"))
    assert out2.shape == (64, 2), out2.shape
    assert jnp.allclose(out2, ref_spp(x2), atol=1e-5, rtol=1e-5)

    print("KERNEL_OK")
</pallas_src>

<mosaic_0001>
module attributes {stable_mosaic.version = 11 : i64} {
  func.func @_spp_avg_kernel_t(%arg0: memref<2x256xf32, #tpu.memory_space<vmem>>, %arg1: memref<64x256xf32, #tpu.memory_space<vmem>>, %arg2: memref<64x2xf32, #tpu.memory_space<vmem>>) attributes {dimension_semantics = [], scalar_prefetch = 0 : i64, scratch_operands = 0 : i64, tpu.core_type = #tpu.core_type<tc>} {
    %c0 = arith.constant 0 : index
    %c0_0 = arith.constant 0 : index
    %0 = vector.load %arg1[%c0, %c0_0] : memref<64x256xf32, #tpu.memory_space<vmem>>, vector<64x256xf32>
    %c0_1 = arith.constant 0 : index
    %c0_2 = arith.constant 0 : index
    %1 = vector.load %arg0[%c0_1, %c0_2] : memref<2x256xf32, #tpu.memory_space<vmem>>, vector<2x256xf32>
    %cst = arith.constant dense<0.000000e+00> : vector<64x2xf32>
    %2 = tpu.matmul %0, %1, %cst {dimension_numbers = #tpu.dot_dimension_numbers<[1], [1], [0], [0], [0, 0, 1, 0], [], []>} : vector<64x256xf32>, vector<2x256xf32>, vector<64x2xf32> -> vector<64x2xf32>
    %cst_3 = arith.constant 2.500000e-01 : f32
    %3 = vector.broadcast %cst_3 : f32 to vector<64x2xf32>
    %4 = arith.mulf %2, %3 : vector<64x2xf32>
    %c0_4 = arith.constant 0 : index
    %c0_5 = arith.constant 0 : index
    %5 = vector.load %arg2[%c0_4, %c0_5] : memref<64x2xf32, #tpu.memory_space<vmem>>, vector<64x2xf32>
    tpu.vector_store %arg2[%c0_4, %c0_5], %4 {strides = array<i32>} : memref<64x2xf32, #tpu.memory_space<vmem>>, vector<64x2xf32>,
    return
  }
}

</mosaic_0001>

<bundles_post_ra>
// kernel: tpu_custom_call.1
= control target key start
LH: loop header
LB: loop body
LE: loop exit
PB: predicated region body
PF: predicated region fallthrough
CT: control target
= control target key end

     0   :  { %7 = vsyncpa [#allocation3], 0  ;;  %s330_s0 = inlined_call_operand.hbm [shape: f32[2,256], index: 0, kind: input, shape index: {}]   ;;  %s331_s1 = inlined_call_operand.hbm [shape: f32[64,256], index: 1, kind: input, shape index: {}]   ;;  %s332_s2 = inlined_call_operand.vmem [shape: f32[64,2], index: 2, kind: output, shape index: {}]  }
   0x1   :  { %8 = vsyncpa [#allocation5], 0  ;;  %s248_s9 = smov [#allocation2]   ;;  %s249_s11 = smov [#allocation4]  }
   0x2   :  { %s15_s10 = sshll.u32 %s248_s9, 4  ;;  %s24_s12 = sshll.u32 %s249_s11, 4  ;;  %s16_s10 = int_to_ptr.vmem [resolvable:$true] %s15_s10  ;;  %s267_s12 = int_to_ptr.vmem [resolvable:$true] %s24_s12 }
   0x3   :  { %s200_s15 = scalar_lea.hbm %s330_s0, 64 }
   0x4   :  { %p201_p0 = scmp.ne.s32.totalorder %s330_s0, %s200_s15  ;;  %p204_p1 = scmp.lt.u32.totalorder %s200_s15, %s330_s0 }
   0x6   :  { %p206_p2 = pnand %p204_p1, %p201_p0 }
   0x8   :  { %209 = shalt.err (!%p206_p2)
}
   0x9   :  { %s210_s20 = scalar_lea.vmem %s16_s10, 64  ;;  %p215_p4 = scmp.lt.s32.totalorder %s16_s10, %s16_s10 }
   0xa   :  { %p211_p3 = scmp.ne.s32.totalorder %s16_s10, %s210_s20  ;;  %p216_p5 = scmp.lt.s32.totalorder %s210_s20, %s210_s20 }
   0xc   :  { %p217_p6 = por %p216_p5, %p215_p4 }
   0xe   :  { %p218_p7 = pnand %p217_p6, %p211_p3 }
  0x10   :  { %221 = shalt.err (!%p218_p7)
}
  0x11   :  { %18 = dma.hbm_to_vmem [thread:$0]  %s330_s0, 64, %s16_s10, [#allocation3]  }
  0x12   :  { %s222_s25 = scalar_lea.hbm %s331_s1, 2048 }
  0x13   :  { %p223_p8 = scmp.ne.s32.totalorder %s331_s1, %s222_s25  ;;  %p226_p9 = scmp.lt.u32.totalorder %s222_s25, %s331_s1 }
  0x15   :  { %p228_p10 = pnand %p226_p9, %p223_p8 }
  0x17   :  { %231 = shalt.err (!%p228_p10)
}
  0x18   :  { %s232_s30 = scalar_lea.vmem %s267_s12, 2048  ;;  %p237_p12 = scmp.lt.s32.totalorder %s267_s12, %s267_s12 }
  0x19   :  { %p233_p11 = scmp.ne.s32.totalorder %s267_s12, %s232_s30  ;;  %p238_p13 = scmp.lt.s32.totalorder %s232_s30, %s232_s30 }
  0x1b   :  { %p239_p0 = por %p238_p13, %p237_p12 }
  0x1d   :  { %p240_p1 = pnand %p239_p0, %p233_p11 }
  0x1f   :  { %243 = shalt.err (!%p240_p1)
}
  0x20   :  { %s250_s0 = smov 256   ;;  %s251_s3 = smov 16  }
  0x21   :  { %30 = dma.hbm_to_vmem [thread:$0]  %s331_s1, 2048, %s267_s12, [#allocation5], %s250_s0, %s250_s0, %s251_s3  }
  0x22   :  { %244 = dma.done.wait [#allocation3], 64  }
  0x23   :  { %245 = vsyncadd [#allocation3], 4294967232 }
  0x24   :  { %246 = dma.done.wait [#allocation5], 2048  }
  0x25   :  { %247 = vsyncadd [#allocation5], 4294965248  ;;  %v193_v0 = vld.sshfl [vmem:[#allocation2] sm:$0x33 pattern:$0x76325410] }
  0x26   :  { %v38_v1 = vld [vmem:[#allocation4 + $0x8] sm:$0xff]  ;;  %v62_v3 = vcombine.high %v193_v0, %v193_v0  ;;  %v37_v4 = vld [vmem:[#allocation4] sm:$0xff]  ;;  %v40_v6 = vld [vmem:[#allocation4 + $0x18] sm:$0xff]  ;;  %vm178_vm0 = vcmask 15360  }
  0x27   :  { %v46_v2 = vld [vmem:[#allocation4 + $0x48] sm:$0xff]  ;;  %129 = vmatprep.mubr.f32.mxu0 %v38_v1  ;;  %v45_v5 = vld [vmem:[#allocation4 + $0x40] sm:$0xff]  ;;  %v48_v7 = vld [vmem:[#allocation4 + $0x58] sm:$0xff] }
  0x28   :  { %149 = vmatprep.mubr.f32.mxu1 %v46_v2  ;;  %65 = vmatprep.subr.mxu0 %v62_v3  ;;  %v39_v8 = vld [vmem:[#allocation4 + $0x10] sm:$0xff]  ;;  %v42_v10 = vld [vmem:[#allocation4 + $0x28] sm:$0xff]  ;;  %v41_v12 = vld [vmem:[#allocation4 + $0x20] sm:$0xff] }
  0x29   :  { %194 = vmatprep.subr.mxu1 %v62_v3  ;;  %66 = vmatpush1.xpose.msra.mxu0 %v193_v0  ;;  %v47_v9 = vld [vmem:[#allocation4 + $0x50] sm:$0xff]  ;;  %v50_v11 = vld [vmem:[#allocation4 + $0x68] sm:$0xff]  ;;  %v49_v13 = vld [vmem:[#allocation4 + $0x60] sm:$0xff] }
  0x2a   :  { %195 = vmatpush1.xpose.msra.mxu1 %v193_v0  ;;  %v44_v14 = vld [vmem:[#allocation4 + $0x38] sm:$0xff]  ;;  %v43_v16 = vld [vmem:[#allocation4 + $0x30] sm:$0xff] }
  0x2b   :  { %v52_v15 = vld [vmem:[#allocation4 + $0x78] sm:$0xff]  ;;  %v51_v17 = vld [vmem:[#allocation4 + $0x70] sm:$0xff] }
  0x2c   :  { %130 = vmatmul.mubr.f32.vlgmr.msra.gmra.mrb[0].mxu0 %v37_v4 }
  0x2d   :  { %150 = vmatmul.mubr.f32.vlgmr.msra.gmra.mrb[0].mxu1 %v45_v5  ;;  %134 = vmatprep.mubr.f32.mxu0 %v40_v6 }
  0x2e   :  { %154 = vmatprep.mubr.f32.mxu1 %v48_v7 }
  0x30   :  { %135 = vmatmul.mubr.f32.gmra.mrb[2].mxu0 %v39_v8 }
  0x31   :  { %155 = vmatmul.mubr.f32.gmra.mrb[2].mxu1 %v47_v9  ;;  %139 = vmatprep.mubr.f32.mxu0 %v42_v10 }
  0x32   :  { %159 = vmatprep.mubr.f32.mxu1 %v50_v11 }
  0x34   :  { %140 = vmatmul.mubr.f32.gmra.mrb[4].mxu0 %v41_v12 }
  0x35   :  { %160 = vmatmul.mubr.f32.gmra.mrb[4].mxu1 %v49_v13  ;;  %144 = vmatprep.mubr.f32.mxu0 %v44_v14 }
  0x36   :  { %164 = vmatprep.mubr.f32.mxu1 %v52_v15 }
  0x38   :  { %145 = vmatmul.mubr.f32.gmra.mrb[6].mxu0 %v43_v16 }
  0x39   :  { %165 = vmatmul.mubr.f32.gmra.mrb[6].mxu1 %v51_v17 }
  0xff   :  { %v131_v18 = vpop.f32.mrb[0].mxu0 }
 0x100   :  { %v151_v19 = vpop.f32.mrb[0].mxu1  ;;  %v170_v20 = vmul.f32 0.25, %v131_v18  ;;  %v133_v22 = vpop.f32.mrb[1].mxu0 }
 0x101   :  { %v174_v21 = vmul.f32 0.25, %v151_v19  ;;  %v153_v23 = vpop.f32.mrb[1].mxu1 }
 0x102   :  { %179 = vst.msk [vmem:[%s332_s2] sm:$0xff] %vm178_vm0, %v170_v20 }
 0x103   :  { %183 = vst.msk [vmem:[%s332_s2 + $0x20] sm:$0xff] %vm178_vm0, %v174_v21  ;;  %v136_v24 = vpop.f32.mrb[2].mxu0 }
 0x104   :  { %v156_v25 = vpop.f32.mrb[2].mxu1  ;;  %v171_v26 = vmul.f32 0.25, %v136_v24  ;;  %v138_v28 = vpop.f32.mrb[3].mxu0 }
 0x105   :  { %v175_v27 = vmul.f32 0.25, %v156_v25  ;;  %v158_v29 = vpop.f32.mrb[3].mxu1 }
 0x106   :  { %180 = vst.msk [vmem:[%s332_s2 + $0x8] sm:$0xff] %vm178_vm0, %v171_v26 }
 0x107   :  { %184 = vst.msk [vmem:[%s332_s2 + $0x28] sm:$0xff] %vm178_vm0, %v175_v27  ;;  %v141_v30 = vpop.f32.mrb[4].mxu0 }
 0x108   :  { %v161_v31 = vpop.f32.mrb[4].mxu1  ;;  %v172_v32 = vmul.f32 0.25, %v141_v30  ;;  %v143_v34 = vpop.f32.mrb[5].mxu0 }
 0x109   :  { %v176_v33 = vmul.f32 0.25, %v161_v31  ;;  %v163_v35 = vpop.f32.mrb[5].mxu1 }
 0x10a   :  { %181 = vst.msk [vmem:[%s332_s2 + $0x10] sm:$0xff] %vm178_vm0, %v172_v32 }
 0x10b   :  { %185 = vst.msk [vmem:[%s332_s2 + $0x30] sm:$0xff] %vm178_vm0, %v176_v33  ;;  %v146_v36 = vpop.f32.mrb[6].mxu0 }
 0x10c   :  { %v166_v37 = vpop.f32.mrb[6].mxu1  ;;  %v173_v38 = vmul.f32 0.25, %v146_v36  ;;  %v148_v40 = vpop.f32.mrb[7].mxu0 }
 0x10d   :  { %v177_v39 = vmul.f32 0.25, %v166_v37  ;;  %v168_v41 = vpop.f32.mrb[7].mxu1 }
 0x10e   :  { %182 = vst.msk [vmem:[%s332_s2 + $0x18] sm:$0xff] %vm178_vm0, %v173_v38 }
 0x10f   :  { %186 = vst.msk [vmem:[%s332_s2 + $0x38] sm:$0xff] %vm178_vm0, %v177_v39 }
 0x110   :  { %191 = vsyncpa [#allocation3], 1 }
 0x111   :  { %192 = vsyncpa [#allocation5], 1 }

</bundles_post_ra>
